<compile_context>
chip_gen: v5e
topology: v5e:2x2
jax: 0.10.0
libtpu: 0.0.40
codegen_flags: <defaults>
</compile_context>

<pallas_src>
import functools
import numpy as np
import jax
import jax.numpy as jnp
from jax import lax
from jax.experimental import pallas as pl
from jax.experimental.pallas import tpu as pltpu

# ---- problem sizes (small, consistent with the module) -----------------------
B = 2          # batch
N = 16         # h_w (query tokens); == H so torch's quirky reshape maps row -> head
S = 8          # seq (context length)
C = 64         # q_dim
CC = 32        # context feature dim
H = 16         # heads (module default)
D = C // H     # per-head dim = 4
SCALE = float(np.sqrt(D))   # self.socale = sqrt(q_dim // head)  (MULTIPLIED, per module)


def _batches_per_step(batch: int) -> int:
    """v5e/v6e have a single TensorCore -> fold the whole batch into one grid step.
    v7x/v4/v5p (or unknown chips) keep a parallel batch grid axis for megacore sharding."""
    kind = ""
    try:
        kind = jax.devices()[0].device_kind.lower()
    except Exception:
        pass
    single_tc = any(t in kind for t in
                    ("v5e", "v5 lite", "v5lite", "v6e", "v6 lite", "v6lite"))
    return batch if single_tc else 1


# ---- kernel -------------------------------------------------------------------
def _cross_attn_kernel(x_ref, ctx_ref, wq_ref, wkv_ref, mask_ref, sel_ref,
                       wpg_ref, bp_ref, o_ref, *, bb):
    f32, bf16 = jnp.float32, jnp.bfloat16

    # Stacked-batch input projections: better MXU M-fill, one push each.
    x2d = x_ref[...].reshape(bb * N, C).astype(bf16)          # (bb*N, C)
    ctx2d = ctx_ref[...].reshape(bb * S, CC).astype(bf16)     # (bb*S, CC)
    # Q weight is (C, 2C) with SCALE folded in and zeros in lanes [C, 2C).
    q_all = jnp.dot(x2d, wq_ref[...], preferred_element_type=f32).astype(bf16)  # (bb*N, 2C)
    # Fused K|V projection: lanes [0,C) hold K, lanes [C,2C) hold V.
    kv_all = jnp.dot(ctx2d, wkv_ref[...], preferred_element_type=f32)           # (bb*S, 2C)

    mask = mask_ref[...]       # (H*S, 2C) bf16 constant (block-diagonal per head, K|V halves)
    sel = sel_ref[...]         # (D*N, 2C) bf16 constant (head-major regroup selector)
    shifts = tuple(S << t for t in range(H.bit_length() - 1))   # (8, 16, 32, 64)

    for ib in range(bb):       # static unroll (bb is 1 or B)
        q_b = q_all[ib * N:(ib + 1) * N, :]                     # (N, 2C) bf16; lanes C: are 0
        kv_b = kv_all[ib * S:(ib + 1) * S, :].astype(bf16)      # (S, 2C) bf16
        # ONE lane-dense pack reused by both matmuls below.
        kv_pack = jnp.tile(kv_b, (H, 1)) * mask                 # (H*S, 2C) bf16

        # scores[i, hd*S + j] = (Q_hd[i] . K_hd[j]) * SCALE  (scale folded into wq).
        # q_b's V lanes are exact zeros -> the V half of the pack contributes nothing.
        scores = lax.dot_general(q_b, kv_pack, (((1,), (1,)), ((), ())),
                                 preferred_element_type=f32)    # (N, H*S) = (16, 128)

        # TODO(synk): optional attention `mask` is not implemented (mask=None path).

        # Softmax over the HEAD axis (nn.Softmax(dim=1)): head hd owns lanes hd*S + j, so
        # the head axis is the stride-S lane coset -> log2(H) roll tree on the XLU.
        m = scores
        for sh in shifts:
            m = jnp.maximum(m, pltpu.roll(m, shift=sh, axis=1))
        e = jnp.exp(scores - m)
        den = e
        for sh in shifts:
            den = den + pltpu.roll(den, shift=sh, axis=1)
        attn = (e * pl.reciprocal(den, approx=True)).astype(bf16)   # (N, H*S)

        # attention @ V in one lane-dense MXU op via the V half of the same pack:
        #   out_nat[i, C + hd*D + d] = sum_j attn[i, hd*S+j] * V_hd[j, d]
        # (the K half produces lanes [0, C) that are never read).
        out_nat = jnp.dot(attn, kv_pack, preferred_element_type=f32)  # (N, 2C)

        # torch quirk `.reshape(b, -1, c)` of the contiguous (b, h, i, d) tensor: with
        # h_w == head, output row r <- head r, column i*D+d.  Gather head-major with a
        # constant 0/1 selector on the MXU:  y[d*N + r, i] = out_nat[i, C + r*D + d].
        y = lax.dot_general(sel, out_nat.astype(bf16), (((1,), (1,)), ((), ())),
                            preferred_element_type=f32)          # (D*N, N)

        # Fused output projection (Linear + bias) with the (d, i)-regrouped weight:
        #   wpg[d, i, :] = Wp_t[i*D + d, :]   =>   proj[r, :] = bp + sum_d y_d[r] @ wpg[d]
        acc = jnp.dot(y[0:N].astype(bf16), wpg_ref[0], preferred_element_type=f32)
        for d in range(1, D):
            acc = acc + jnp.dot(y[d * N:(d + 1) * N].astype(bf16), wpg_ref[d],
                                preferred_element_type=f32)

        o_ref[ib] = (acc + bp_ref[...]).astype(o_ref.dtype)


# ---- one-time parameter preparation (host side, call once at init) ------------
def prepare_params(wq_t, wk_t, wv_t, wp_t, bp):
    bf16 = jnp.bfloat16
    # Q weight: SCALE folded in (exact, SCALE == 2.0), zero-padded to 2C lanes.
    wq128 = jnp.concatenate([wq_t * SCALE, jnp.zeros((C, C), wq_t.dtype)],
                            axis=1).astype(bf16)                               # (C, 2C)
    # Fused K|V projection weight.
    wkv = jnp.concatenate([wk_t, wv_t], axis=1).astype(bf16)                   # (CC, 2C)

    # Block-diagonal pack mask: rows hd*S + j; K half (cols < C) and V half (cols >= C)
    # each keep only head hd's D feature columns.
    row_head = np.arange(H * S)[:, None] // S
    col = np.arange(2 * C)[None, :]
    mask = ((col < C) & (col // D == row_head)) | \
           ((col >= C) & ((col - C) // D == row_head))
    mask_kv = jnp.asarray(mask.astype(np.float32), bf16)                        # (H*S, 2C)

    # Head-major regroup selector (picks only V-half lanes): sel[m, C + (m%N)*D + m//N] = 1.
    m_idx = np.arange(D * N)[:, None]
    c_idx = np.arange(2 * C)[None, :]
    sel = (c_idx == C + (m_idx % N) * D + m_idx // N)
    sel_ext = jnp.asarray(sel.astype(np.float32), bf16)                         # (D*N, 2C)

    # Projection weight regrouped once: wpg[d, i, :] = wp_t[i*D + d, :].
    wpg = wp_t.reshape(N, D, C).transpose(1, 0, 2).astype(bf16)                 # (D, N, C)
    bp2 = bp.reshape(1, C).astype(jnp.float32)                                  # (1, C)
    return (wq128, wkv, mask_kv, sel_ext, wpg, bp2)


# ---- wrapper ------------------------------------------------------------------
def cross_attention(x, context, params):
    wq128, wkv, mask_kv, sel_ext, wpg, bp2 = params
    b, n, c = x.shape
    _, s, cc = context.shape
    # Kernel is specialized to these sizes; the head-axis roll tree and the head-major
    # regroup assume H*S == 2*C == 128, power-of-two H and S, and h_w == head.
    assert (n, c, s, cc) == (N, C, S, CC)
    assert n == H and c == H * D and H * S == 2 * C == 128
    assert (H & (H - 1)) == 0 and (S & (S - 1)) == 0

    bb = _batches_per_step(b)
    if b % bb != 0:
        bb = 1
    grid = (b // bb,)

    kernel = functools.partial(_cross_attn_kernel, bb=bb)
    return pl.pallas_call(
        kernel,
        out_shape=jax.ShapeDtypeStruct((b, n, c), jnp.float32),
        grid_spec=pltpu.PrefetchScalarGridSpec(
            num_scalar_prefetch=0,
            grid=grid,
            in_specs=[
                pl.BlockSpec((bb, n, c), lambda i: (i, 0, 0)),      # x
                pl.BlockSpec((bb, s, cc), lambda i: (i, 0, 0)),     # context
                pl.BlockSpec((c, 2 * c), lambda i: (0, 0)),         # wq128 (scaled, padded)
                pl.BlockSpec((cc, 2 * c), lambda i: (0, 0)),        # fused wk|wv
                pl.BlockSpec((H * S, 2 * c), lambda i: (0, 0)),     # block-diag pack mask
                pl.BlockSpec((D * n, 2 * c), lambda i: (0, 0)),     # regroup selector
                pl.BlockSpec((D, n, c), lambda i: (0, 0, 0)),       # wpg
                pl.BlockSpec((1, c), lambda i: (0, 0)),             # bias
            ],
            out_specs=pl.BlockSpec((bb, n, c), lambda i: (i, 0, 0)),
        ),
        compiler_params=pltpu.CompilerParams(
            dimension_semantics=("parallel",)),
    )(x, context, wq128, wkv, mask_kv, sel_ext, wpg, bp2)


cross_attention_jit = jax.jit(cross_attention)


# ---- pure-JAX reference (mirrors the PyTorch forward exactly, in f32) ---------
def reference(x, context, wq_t, wk_t, wv_t, wp_t, bp):
    b, n, c = x.shape
    s = context.shape[1]
    q = (x @ wq_t).reshape(b, n, H, D).transpose(0, 2, 1, 3)
    k = (context @ wk_t).reshape(b, s, H, D).transpose(0, 2, 1, 3)
    v = (context @ wv_t).reshape(b, s, H, D).transpose(0, 2, 1, 3)
    dots = jnp.einsum('bhid,bhjd->bhij', q, k) * SCALE
    dots = jax.nn.softmax(dots, axis=1)          # softmax over the head axis (quirk)
    out = jnp.matmul(dots, v).reshape(b, -1, c)  # plain C-order reshape (quirk)
    return out @ wp_t + bp


if __name__ == "__main__":
    key = jax.random.PRNGKey(0)
    k1, k2, k3, k4, k5, k6, k7 = jax.random.split(key, 7)

    x = jax.random.normal(k1, (B, N, C), jnp.float32)
    context = jax.random.normal(k2, (B, S, CC), jnp.float32)

    # Deterministic synthetic parameters (stored as W.T, i.e. (in_dim, out_dim)).
    wq_t = 0.1 * jax.random.normal(k3, (C, C), jnp.float32)
    wk_t = 0.1 * jax.random.normal(k4, (CC, C), jnp.float32)
    wv_t = 0.1 * jax.random.normal(k5, (CC, C), jnp.float32)
    wp_t = 0.1 * jax.random.normal(k6, (C, C), jnp.float32)
    bp = 0.1 * jax.random.normal(k7, (C,), jnp.float32)

    # One-time (init-time) parameter preparation: casts / permutes / constant masks.
    params = jax.tree_util.tree_map(jax.block_until_ready,
                                    prepare_params(wq_t, wk_t, wv_t, wp_t, bp))

    out = cross_attention_jit(x, context, params)
    out = jax.block_until_ready(out)

    ref = jax.block_until_ready(reference(x, context, wq_t, wk_t, wv_t, wp_t, bp))
    if not np.allclose(np.asarray(out), np.asarray(ref), rtol=5e-2, atol=5e-2):
        raise AssertionError("Pallas CrossAttention mismatch vs JAX reference")

    print("KERNEL_OK")
</pallas_src>

<mosaic_0001>
module attributes {stable_mosaic.version = 11 : i64} {
  func.func @_cross_attn_kernel(%arg0: i32, %arg1: memref<1x16x64xf32, #tpu.memory_space<vmem>>, %arg2: memref<1x8x32xf32, #tpu.memory_space<vmem>>, %arg3: memref<64x128xbf16, #tpu.memory_space<vmem>>, %arg4: memref<32x128xbf16, #tpu.memory_space<vmem>>, %arg5: memref<128x128xbf16, #tpu.memory_space<vmem>>, %arg6: memref<64x128xbf16, #tpu.memory_space<vmem>>, %arg7: memref<4x16x64xbf16, #tpu.memory_space<vmem>>, %arg8: memref<1x64xf32, #tpu.memory_space<vmem>>, %arg9: memref<1x16x64xf32, #tpu.memory_space<vmem>>) attributes {dimension_semantics = [#tpu.dimension_semantics<parallel>], iteration_bounds = array<i64: 2>, scalar_prefetch = 0 : i64, scratch_operands = 0 : i64, tpu.core_type = #tpu.core_type<tc>, window_params = [{transform_indices = @transform_0, window_bounds = array<i64: 1, 16, 64>}, {transform_indices = @transform_1, window_bounds = array<i64: 1, 8, 32>}, {pipeline_mode = #tpu.pipeline_mode<synchronous>, transform_indices = @transform_2, window_bounds = array<i64: 64, 128>}, {pipeline_mode = #tpu.pipeline_mode<synchronous>, transform_indices = @transform_3, window_bounds = array<i64: 32, 128>}, {pipeline_mode = #tpu.pipeline_mode<synchronous>, transform_indices = @transform_4, window_bounds = array<i64: 128, 128>}, {pipeline_mode = #tpu.pipeline_mode<synchronous>, transform_indices = @transform_5, window_bounds = array<i64: 64, 128>}, {pipeline_mode = #tpu.pipeline_mode<synchronous>, transform_indices = @transform_6, window_bounds = array<i64: 4, 16, 64>}, {pipeline_mode = #tpu.pipeline_mode<synchronous>, transform_indices = @transform_7, window_bounds = array<i64: 1, 64>}, {transform_indices = @transform_8, window_bounds = array<i64: 1, 16, 64>}]} {
    %c0 = arith.constant 0 : index
    %c0_0 = arith.constant 0 : index
    %c0_1 = arith.constant 0 : index
    %0 = vector.load %arg1[%c0, %c0_0, %c0_1] : memref<1x16x64xf32, #tpu.memory_space<vmem>>, vector<1x16x64xf32>
    %1 = vector.shape_cast %0 : vector<1x16x64xf32> to vector<16x64xf32>
    %2 = arith.truncf %1 : vector<16x64xf32> to vector<16x64xbf16>
    %c0_2 = arith.constant 0 : index
    %c0_3 = arith.constant 0 : index
    %c0_4 = arith.constant 0 : index
    %3 = vector.load %arg2[%c0_2, %c0_3, %c0_4] : memref<1x8x32xf32, #tpu.memory_space<vmem>>, vector<1x8x32xf32>
    %4 = vector.shape_cast %3 : vector<1x8x32xf32> to vector<8x32xf32>
    %5 = arith.truncf %4 : vector<8x32xf32> to vector<8x32xbf16>
    %c0_5 = arith.constant 0 : index
    %c0_6 = arith.constant 0 : index
    %6 = vector.load %arg3[%c0_5, %c0_6] : memref<64x128xbf16, #tpu.memory_space<vmem>>, vector<64x128xbf16>
    %cst = arith.constant dense<0.000000e+00> : vector<16x128xf32>
    %7 = tpu.matmul %2, %6, %cst {dimension_numbers = #tpu.dot_dimension_numbers<[1], [0], [0], [1], [0, 0, 1, 1], [], []>} : vector<16x64xbf16>, vector<64x128xbf16>, vector<16x128xf32> -> vector<16x128xf32>
    %8 = arith.truncf %7 : vector<16x128xf32> to vector<16x128xbf16>
    %c0_7 = arith.constant 0 : index
    %c0_8 = arith.constant 0 : index
    %9 = vector.load %arg4[%c0_7, %c0_8] : memref<32x128xbf16, #tpu.memory_space<vmem>>, vector<32x128xbf16>
    %cst_9 = arith.constant dense<0.000000e+00> : vector<8x128xf32>
    %10 = tpu.matmul %5, %9, %cst_9 {dimension_numbers = #tpu.dot_dimension_numbers<[1], [0], [0], [1], [0, 0, 1, 1], [], []>} : vector<8x32xbf16>, vector<32x128xbf16>, vector<8x128xf32> -> vector<8x128xf32>
    %c0_10 = arith.constant 0 : index
    %c0_11 = arith.constant 0 : index
    %11 = vector.load %arg5[%c0_10, %c0_11] : memref<128x128xbf16, #tpu.memory_space<vmem>>, vector<128x128xbf16>
    %c0_12 = arith.constant 0 : index
    %c0_13 = arith.constant 0 : index
    %12 = vector.load %arg6[%c0_12, %c0_13] : memref<64x128xbf16, #tpu.memory_space<vmem>>, vector<64x128xbf16>
    %13 = arith.truncf %10 : vector<8x128xf32> to vector<8x128xbf16>
    %14 = tpu.concatenate %13, %13, %13, %13, %13, %13, %13, %13, %13, %13, %13, %13, %13, %13, %13, %13 in 0 : vector<8x128xbf16>, vector<8x128xbf16>, vector<8x128xbf16>, vector<8x128xbf16>, vector<8x128xbf16>, vector<8x128xbf16>, vector<8x128xbf16>, vector<8x128xbf16>, vector<8x128xbf16>, vector<8x128xbf16>, vector<8x128xbf16>, vector<8x128xbf16>, vector<8x128xbf16>, vector<8x128xbf16>, vector<8x128xbf16>, vector<8x128xbf16> -> vector<128x128xbf16>
    %15 = arith.mulf %14, %11 : vector<128x128xbf16>
    %cst_14 = arith.constant dense<0.000000e+00> : vector<16x128xf32>
    %16 = tpu.matmul %8, %15, %cst_14 {dimension_numbers = #tpu.dot_dimension_numbers<[1], [1], [0], [0], [0, 0, 1, 0], [], []>} : vector<16x128xbf16>, vector<128x128xbf16>, vector<16x128xf32> -> vector<16x128xf32>
    %c8_i32 = arith.constant 8 : i32
    %17 = tpu.dynamic_rotate %16 by %c8_i32 dim 1 : vector<16x128xf32>, i32 -> vector<16x128xf32>
    %18 = arith.maximumf %16, %17 : vector<16x128xf32>
    %c16_i32 = arith.constant 16 : i32
    %19 = tpu.dynamic_rotate %18 by %c16_i32 dim 1 : vector<16x128xf32>, i32 -> vector<16x128xf32>
    %20 = arith.maximumf %18, %19 : vector<16x128xf32>
    %c32_i32 = arith.constant 32 : i32
    %21 = tpu.dynamic_rotate %20 by %c32_i32 dim 1 : vector<16x128xf32>, i32 -> vector<16x128xf32>
    %22 = arith.maximumf %20, %21 : vector<16x128xf32>
    %c64_i32 = arith.constant 64 : i32
    %23 = tpu.dynamic_rotate %22 by %c64_i32 dim 1 : vector<16x128xf32>, i32 -> vector<16x128xf32>
    %24 = arith.maximumf %22, %23 : vector<16x128xf32>
    %25 = arith.subf %16, %24 : vector<16x128xf32>
    %26 = math.exp %25 : vector<16x128xf32>
    %c8_i32_15 = arith.constant 8 : i32
    %27 = tpu.dynamic_rotate %26 by %c8_i32_15 dim 1 : vector<16x128xf32>, i32 -> vector<16x128xf32>
    %28 = arith.addf %26, %27 : vector<16x128xf32>
    %c16_i32_16 = arith.constant 16 : i32
    %29 = tpu.dynamic_rotate %28 by %c16_i32_16 dim 1 : vector<16x128xf32>, i32 -> vector<16x128xf32>
    %30 = arith.addf %28, %29 : vector<16x128xf32>
    %c32_i32_17 = arith.constant 32 : i32
    %31 = tpu.dynamic_rotate %30 by %c32_i32_17 dim 1 : vector<16x128xf32>, i32 -> vector<16x128xf32>
    %32 = arith.addf %30, %31 : vector<16x128xf32>
    %c64_i32_18 = arith.constant 64 : i32
    %33 = tpu.dynamic_rotate %32 by %c64_i32_18 dim 1 : vector<16x128xf32>, i32 -> vector<16x128xf32>
    %34 = arith.addf %32, %33 : vector<16x128xf32>
    %35 = tpu.reciprocal %34 {approx = true} : vector<16x128xf32> -> vector<16x128xf32>
    %36 = arith.mulf %26, %35 : vector<16x128xf32>
    %37 = arith.truncf %36 : vector<16x128xf32> to vector<16x128xbf16>
    %cst_19 = arith.constant dense<0.000000e+00> : vector<16x128xf32>
    %38 = tpu.matmul %37, %15, %cst_19 {dimension_numbers = #tpu.dot_dimension_numbers<[1], [0], [0], [1], [0, 0, 1, 1], [], []>} : vector<16x128xbf16>, vector<128x128xbf16>, vector<16x128xf32> -> vector<16x128xf32>
    %39 = arith.truncf %38 : vector<16x128xf32> to vector<16x128xbf16>
    %cst_20 = arith.constant dense<0.000000e+00> : vector<64x16xf32>
    %40 = tpu.matmul %12, %39, %cst_20 {dimension_numbers = #tpu.dot_dimension_numbers<[1], [1], [0], [0], [0, 0, 1, 0], [], []>} : vector<64x128xbf16>, vector<16x128xbf16>, vector<64x16xf32> -> vector<64x16xf32>
    %41 = vector.extract_strided_slice %40 {offsets = [0, 0], sizes = [16, 16], strides = [1, 1]} : vector<64x16xf32> to vector<16x16xf32>
    %42 = arith.truncf %41 : vector<16x16xf32> to vector<16x16xbf16>
    %c0_21 = arith.constant 0 : index
    %c0_22 = arith.constant 0 : index
    %c0_23 = arith.constant 0 : index
    %43 = vector.load %arg7[%c0_21, %c0_22, %c0_23] : memref<4x16x64xbf16, #tpu.memory_space<vmem>>, vector<1x16x64xbf16>
    %44 = vector.shape_cast %43 : vector<1x16x64xbf16> to vector<16x64xbf16>
    %cst_24 = arith.constant dense<0.000000e+00> : vector<16x64xf32>
    %45 = tpu.matmul %42, %44, %cst_24 {dimension_numbers = #tpu.dot_dimension_numbers<[1], [0], [0], [1], [0, 0, 1, 1], [], []>} : vector<16x16xbf16>, vector<16x64xbf16>, vector<16x64xf32> -> vector<16x64xf32>
    %46 = vector.extract_strided_slice %40 {offsets = [16, 0], sizes = [16, 16], strides = [1, 1]} : vector<64x16xf32> to vector<16x16xf32>
    %47 = arith.truncf %46 : vector<16x16xf32> to vector<16x16xbf16>
    %c1 = arith.constant 1 : index
    %c0_25 = arith.constant 0 : index
    %c0_26 = arith.constant 0 : index
    %48 = vector.load %arg7[%c1, %c0_25, %c0_26] : memref<4x16x64xbf16, #tpu.memory_space<vmem>>, vector<1x16x64xbf16>
    %49 = vector.shape_cast %48 : vector<1x16x64xbf16> to vector<16x64xbf16>
    %cst_27 = arith.constant dense<0.000000e+00> : vector<16x64xf32>
    %50 = tpu.matmul %47, %49, %cst_27 {dimension_numbers = #tpu.dot_dimension_numbers<[1], [0], [0], [1], [0, 0, 1, 1], [], []>} : vector<16x16xbf16>, vector<16x64xbf16>, vector<16x64xf32> -> vector<16x64xf32>
    %51 = arith.addf %45, %50 : vector<16x64xf32>
    %52 = vector.extract_strided_slice %40 {offsets = [32, 0], sizes = [16, 16], strides = [1, 1]} : vector<64x16xf32> to vector<16x16xf32>
    %53 = arith.truncf %52 : vector<16x16xf32> to vector<16x16xbf16>
    %c2 = arith.constant 2 : index
    %c0_28 = arith.constant 0 : index
    %c0_29 = arith.constant 0 : index
    %54 = vector.load %arg7[%c2, %c0_28, %c0_29] : memref<4x16x64xbf16, #tpu.memory_space<vmem>>, vector<1x16x64xbf16>
    %55 = vector.shape_cast %54 : vector<1x16x64xbf16> to vector<16x64xbf16>
    %cst_30 = arith.constant dense<0.000000e+00> : vector<16x64xf32>
    %56 = tpu.matmul %53, %55, %cst_30 {dimension_numbers = #tpu.dot_dimension_numbers<[1], [0], [0], [1], [0, 0, 1, 1], [], []>} : vector<16x16xbf16>, vector<16x64xbf16>, vector<16x64xf32> -> vector<16x64xf32>
    %57 = arith.addf %51, %56 : vector<16x64xf32>
    %58 = vector.extract_strided_slice %40 {offsets = [48, 0], sizes = [16, 16], strides = [1, 1]} : vector<64x16xf32> to vector<16x16xf32>
    %59 = arith.truncf %58 : vector<16x16xf32> to vector<16x16xbf16>
    %c3 = arith.constant 3 : index
    %c0_31 = arith.constant 0 : index
    %c0_32 = arith.constant 0 : index
    %60 = vector.load %arg7[%c3, %c0_31, %c0_32] : memref<4x16x64xbf16, #tpu.memory_space<vmem>>, vector<1x16x64xbf16>
    %61 = vector.shape_cast %60 : vector<1x16x64xbf16> to vector<16x64xbf16>
    %cst_33 = arith.constant dense<0.000000e+00> : vector<16x64xf32>
    %62 = tpu.matmul %59, %61, %cst_33 {dimension_numbers = #tpu.dot_dimension_numbers<[1], [0], [0], [1], [0, 0, 1, 1], [], []>} : vector<16x16xbf16>, vector<16x64xbf16>, vector<16x64xf32> -> vector<16x64xf32>
    %63 = arith.addf %57, %62 : vector<16x64xf32>
    %c0_34 = arith.constant 0 : index
    %c0_35 = arith.constant 0 : index
    %64 = vector.load %arg8[%c0_34, %c0_35] : memref<1x64xf32, #tpu.memory_space<vmem>>, vector<1x64xf32>
    %65 = vector.broadcast %64 : vector<1x64xf32> to vector<16x64xf32>
    %66 = arith.addf %63, %65 : vector<16x64xf32>
    %c0_36 = arith.constant 0 : index
    %c0_37 = arith.constant 0 : index
    %c0_38 = arith.constant 0 : index
    %67 = vector.load %arg9[%c0_36, %c0_37, %c0_38] : memref<1x16x64xf32, #tpu.memory_space<vmem>>, vector<1x16x64xf32>
    %68 = vector.shape_cast %67 : vector<1x16x64xf32> to vector<16x64xf32>
    %69 = vector.shape_cast %66 : vector<16x64xf32> to vector<1x16x64xf32>
    tpu.vector_store %arg9[%c0_36, %c0_37, %c0_38], %69 {strides = array<i32>} : memref<1x16x64xf32, #tpu.memory_space<vmem>>, vector<1x16x64xf32>,
    return
  }
  func.func @transform_0(%arg0: i32) -> (i32, i32, i32) {
    %c0_i32 = arith.constant 0 : i32
    %c0_i32_0 = arith.constant 0 : i32
    %c0_i32_1 = arith.constant 0 : i32
    return %arg0, %c0_i32, %c0_i32_0 : i32, i32, i32
  }
  func.func @transform_1(%arg0: i32) -> (i32, i32, i32) {
    %c0_i32 = arith.constant 0 : i32
    %c0_i32_0 = arith.constant 0 : i32
    %c0_i32_1 = arith.constant 0 : i32
    return %arg0, %c0_i32, %c0_i32_0 : i32, i32, i32
  }
  func.func @transform_2(%arg0: i32) -> (i32, i32) {
    %c0_i32 = arith.constant 0 : i32
    %c0_i32_0 = arith.constant 0 : i32
    %c0_i32_1 = arith.constant 0 : i32
    return %c0_i32, %c0_i32_0 : i32, i32
  }
  func.func @transform_3(%arg0: i32) -> (i32, i32) {
    %c0_i32 = arith.constant 0 : i32
    %c0_i32_0 = arith.constant 0 : i32
    %c0_i32_1 = arith.constant 0 : i32
    return %c0_i32, %c0_i32_0 : i32, i32
  }
  func.func @transform_4(%arg0: i32) -> (i32, i32) {
    %c0_i32 = arith.constant 0 : i32
    %c0_i32_0 = arith.constant 0 : i32
    %c0_i32_1 = arith.constant 0 : i32
    return %c0_i32, %c0_i32_0 : i32, i32
  }
  func.func @transform_5(%arg0: i32) -> (i32, i32) {
    %c0_i32 = arith.constant 0 : i32
    %c0_i32_0 = arith.constant 0 : i32
    %c0_i32_1 = arith.constant 0 : i32
    return %c0_i32, %c0_i32_0 : i32, i32
  }
  func.func @transform_6(%arg0: i32) -> (i32, i32, i32) {
    %c0_i32 = arith.constant 0 : i32
    %c0_i32_0 = arith.constant 0 : i32
    %c0_i32_1 = arith.constant 0 : i32
    %c0_i32_2 = arith.constant 0 : i32
    return %c0_i32, %c0_i32_0, %c0_i32_1 : i32, i32, i32
  }
  func.func @transform_7(%arg0: i32) -> (i32, i32) {
    %c0_i32 = arith.constant 0 : i32
    %c0_i32_0 = arith.constant 0 : i32
    %c0_i32_1 = arith.constant 0 : i32
    return %c0_i32, %c0_i32_0 : i32, i32
  }
  func.func @transform_8(%arg0: i32) -> (i32, i32, i32) {
    %c0_i32 = arith.constant 0 : i32
    %c0_i32_0 = arith.constant 0 : i32
    %c0_i32_1 = arith.constant 0 : i32
    return %arg0, %c0_i32, %c0_i32_0 : i32, i32, i32
  }
}

</mosaic_0001>

<bundles_post_ra>
// kernel: cross_attention.1
= control target key start
LH: loop header
LB: loop body
LE: loop exit
PB: predicated region body
PF: predicated region fallthrough
CT: control target
= control target key end

     0   :  { %s1886_s0 = inlined_call_operand.hbm [shape: f32[2,16,64], index: 0, kind: input, shape index: {}]   ;;  %s1887_s1 = inlined_call_operand.hbm [shape: f32[2,8,32], index: 1, kind: input, shape index: {}]   ;;  %s1888_s2 = inlined_call_operand.hbm [shape: bf16[64,128], index: 2, kind: input, shape index: {}]   ;;  %s1889_s3 = inlined_call_operand.hbm [shape: bf16[32,128], index: 3, kind: input, shape index: {}]   ;;  %s1890_s4 = inlined_call_operand.hbm [shape: bf16[128,128], index: 4, kind: input, shape index: {}]   ;;  %s1891_s5 = inlined_call_operand.hbm [shape: bf16[64,128], index: 5, kind: input, shape index: {}]   ;;  %s1892_s6 = inlined_call_operand.hbm [shape: bf16[4,16,64], index: 6, kind: input, shape index: {}]   ;;  %s1893_s7 = inlined_call_operand.vmem [shape: f32[1,64], index: 7, kind: input, shape index: {}]   ;;  %s1894_s8 = inlined_call_operand.hbm [shape: f32[2,16,64], index: 8, kind: output, shape index: {}]  }
   0x1   :  { %1896 = sst [smem:[#allocation23_spill]] %s1886_s0 }
   0x2   :  { %1897 = sst [smem:[#allocation24_spill]] %s1888_s2 }
   0x3   :  { %1898 = sst [smem:[#allocation25_spill]] %s1889_s3 }
   0x4   :  { %1899 = sst [smem:[#allocation26_spill]] %s1890_s4 }
   0x5   :  { %1900 = sst [smem:[#allocation27_spill]] %s1891_s5 }
   0x6   :  { %1901 = sst [smem:[#allocation28_spill]] %s1892_s6 }
   0x7   :  { %13 = vsyncpa [#allocation3], 0 }
   0x8   :  { %15 = vsyncpa [#allocation3 + $0x1], 0 }
   0x9   :  { %16 = vsyncpa [#allocation6], 0 }
   0xa   :  { %18 = vsyncpa [#allocation6 + $0x1], 0 }
   0xb   :  { %19 = vsyncpa [#allocation9], 0 }
   0xc   :  { %20 = vsyncpa [#allocation12], 0 }
   0xd   :  { %21 = vsyncpa [#allocation4], 0 }
   0xe   :  { %23 = vsyncpa [#allocation4 + $0x1], 0  ;;  %s1649_s27 = smov 0   ;;  %s1651_s28 = smov 0  }
   0xf   :  { %s1653_s29 = smov 0   ;;  %s1655_s30 = smov 0  }
  0x10 LB: > { %1902 = sst [smem:[#allocation21_spill]] %s1584_s29  ;;  %s1673_s12 = sadd.s32 4294967295, %s1588_s30   ;;  %s1588_s30 = sphi %s1655_s30, %s1922_s30   ;;  %s1584_s29 = sphi %s1653_s29, %s1919_s29   ;;  %s1580_s28 = sphi %s1651_s28, %s1921_s28   ;;  %s1576_s27 = sphi %s1649_s27, %s1920_s27  }
  0x11   : > { %s1903_s2 = sld [smem:[#allocation24_spill]]  ;;  %p1033_p0 = scmp.ge.s32.totalorder %s1588_s30, 1 }
  0x12   : > { %p50_p1 = scmp.eq.s32.totalorder %s1673_s12, 0  ;;  %p238_p2 = scmp.lt.s32.totalorder %s1588_s30, 3 }
  0x13   : > { %s1590_s14 = smov [#allocation7]   ;;  %s1905_s3 = sld [smem:[#allocation25_spill]] }
  0x14   : > { %p1678_p3 = pnand %p1033_p0, %p238_p2  ;;  %s251_s15 = sshll.u32 %s1590_s14, 4  ;;  %s252_s15 = int_to_ptr.vmem [resolvable:$true] %s251_s15 }
  0x15   : > { %s1907_s5 = sld [smem:[#allocation27_spill]]  ;;  %s1591_s23 = smov [#allocation8]  }
  0x16   : > { %p1202_p4 = pneg %p1678_p3  ;;  %s265_s24 = sshll.u32 %s1591_s23, 4  ;;  %s266_s24 = int_to_ptr.vmem [resolvable:$true] %s265_s24 }
  0x17   : > { %s249_s11 = sshll.u32 %s1903_s2, 4  ;;  %s1592_s25 = smov 64   ;;  %s250_s11 = int_to_ptr.hbm [resolvable:$true] %s249_s11 }
  0x18   : > { %p1690_p6 = pnand %p1202_p4, %p50_p1  ;;  %s1593_s26 = smov 4  }
  0x19   : > { %s263_s18 = sshll.u32 %s1905_s3, 4  ;;  %s1908_s4 = sld [smem:[#allocation26_spill]]  ;;  %s264_s18 = int_to_ptr.hbm [resolvable:$true] %s263_s18 }
  0x1a   : > { %1205 = dma.hbm_to_vmem [thread:$0]  (!%p1690_p6), %s250_s11, 512, %s252_s15, [#allocation6], %s1592_s25, %s1592_s25, %s1593_s26  }
  0x1b   : > { %s291_s22 = sshll.u32 %s1907_s5, 4  ;;  %s1594_s16 = smov [#allocation11]   ;;  %s292_s22 = int_to_ptr.hbm [resolvable:$true] %s291_s22 }
  0x1c   : > { %1208 = dma.hbm_to_vmem [thread:$0]  (!%p1690_p6), %s264_s18, 256, %s266_s24, [#allocation9], %s1592_s25, %s1592_s25, %s1593_s26  }
  0x1d   : > { %s293_s17 = sshll.u32 %s1594_s16, 4  ;;  %s1595_s11 = smov [#allocation10]   ;;  %s294_s17 = int_to_ptr.vmem [resolvable:$true] %s293_s17 }
  0x1e   : > { %1214 = dma.hbm_to_vmem [thread:$0]  (!%p1690_p6), %s292_s22, 512, %s294_s17, [#allocation12], %s1592_s25, %s1592_s25, %s1593_s26  }
  0x1f   : > { %s277_s14 = sshll.u32 %s1908_s4, 4  ;;  %s279_s15 = sshll.u32 %s1595_s11, 4  ;;  %s278_s14 = int_to_ptr.hbm [resolvable:$true] %s277_s14  ;;  %s280_s15 = int_to_ptr.vmem [resolvable:$true] %s279_s15 }
  0x20   : > { %s1909_s6 = sld [smem:[#allocation28_spill]]  ;;  %s1596_s23 = smov [#allocation13]  }
  0x21   : > { %1211 = dma.hbm_to_vmem [thread:$0]  (!%p1690_p6), %s278_s14, 1024, %s280_s15, [#allocation9], %s1592_s25, %s1592_s25, %s1593_s26  }
  0x22   : > { %s307_s24 = sshll.u32 %s1596_s23, 4  ;;  %s1032_s22 = sadd.s32 4294967294, %s1588_s30   ;;  %s308_s24 = int_to_ptr.vmem [resolvable:$true] %s307_s24 }
  0x23   : > { %s1715_s9 = sadd.s32 1, %s1588_s30   ;;  %s36_s10 = sadd.s32 1, %s1584_s29 }
  0x24   : > { %s33_s16 = ssub.s32 %s1588_s30, %s1715_s9  ;;  %p43_p7 = scmp.ne.s32.totalorder %s1584_s29, %s1580_s28 }
  0x25   : > { %p34_p8 = scmp.eq.s32.totalorder %s33_s16, 0  ;;  %p44_p9 = scmp.eq.s32.totalorder %s1588_s30, 0 }
  0x26   : > { %s305_s21 = sshll.u32 %s1909_s6, 4  ;;  %p49_p10 = scmp.ne.s32.totalorder %s1580_s28, %s1576_s27  ;;  %s306_s21 = int_to_ptr.hbm [resolvable:$true] %s305_s21 }
  0x27   : > { %1217 = dma.hbm_to_vmem [thread:$0]  (!%p1690_p6), %s306_s21, 512, %s308_s24, [#allocation12], %s1592_s25, %s1592_s25, %s1593_s26  }
  0x28   : > { %p225_p11 = scmp.eq.s32.totalorder %s1673_s12, 1  ;;  %p1729_p12 = por %p44_p9, %p43_p7 }
  0x29   : > { %s1727_s14 = scalar_select %p34_p8, %s1584_s29, %s36_s10  }
  0x2a   : > { %p1735_p13 = por %p50_p1, %p49_p10  ;;  %p1739_p0 = por %p225_p11, %p43_p7 }
  0x2b   : > { %1910 = sst [smem:[#allocation22_spill]] %s1727_s14  ;;  %p231_p2 = scmp.eq.s32.totalorder %s1032_s22, 1 }
  0x2c   : > { %p1234_p4 = scmp.lt.s32.totalorder %s1588_s30, 2  ;;  %s1745_s26 = sand.u32 1, %s1584_s29  }
  0x2d   : > { %p1747_p6 = por %p231_p2, %p49_p10  ;;  %s1040_s15 = sshll.u32 %s1745_s26, 4 }
  0x2e   : > { %s1121_s18 = sshll.u32 %s1588_s30, 4  ;;  %s1915_s0 = sld [smem:[#allocation23_spill]] }
  0x2f   : > { %s328_s10 = scalar_lea.vmem [#allocation2], %s1040_s15  ;;  %p1758_p7 = pnand %p1234_p4, %p1729_p12 }
  0x30   : > { %s336_s16 = sshll.u32 %s328_s10, 4  ;;  %s346_s2 = sand.u32 1, %s1588_s30   ;;  %s337_s16 = int_to_ptr.vmem [resolvable:$true] %s336_s16 }
  0x31   : > { %s325_s3 = scalar_lea.sflag [#allocation3], %s1745_s26  ;;  %p1450_p9 = pneg %p1758_p7 }
  0x34   : > { %s333_s23 = scalar_lea.hbm %s1915_s0, %s1121_s18  ;;  %s1453_s18 = scalar_lea.hbm %s1915_s0, 32 }
  0x35   : > { %s334_s24 = sshll.u32 %s333_s23, 4  ;;  %s335_s24 = int_to_ptr.hbm [resolvable:$true] %s334_s24 }
  0x36   : > { %s1446_s4 = sshra.s32 %s335_s24, 4  ;;  %s1447_s4 = int_to_ptr.hbm [resolvable:$true] %s1446_s4 }
  0x37   : > { %s1448_s5 = scalar_lea.hbm %s1447_s4, 16  ;;  %p1454_p12 = scmp.lt.s32.totalorder %s1447_s4, %s1915_s0 }
  0x38   : > { %p1449_p8 = scmp.ne.s32.totalorder %s1447_s4, %s1448_s5  ;;  %p1455_p2 = scmp.lt.s32.totalorder %s1453_s18, %s1448_s5 }
  0x3a   : > { %p1451_p10 = pnand %p1450_p9, %p1449_p8  ;;  %p1456_p4 = por %p1455_p2, %p1454_p12 }
  0x3c   : > { %p1452_p11 = pneg %p1451_p10 }
  0x3e   : > { %p1457_p5 = pnand %p1456_p4, %p1452_p11 }
  0x40   : > { %1460 = shalt.err (!%p1457_p5)
}
  0x41   : > { %s1597_s23 = smov 128   ;;  %s1598_s10 = smov 8  }
  0x42   : > { %1221 = dma.hbm_to_vmem [thread:$0]  (!%p1758_p7), %s335_s24, 256, %s337_s16, %s325_s3, %s1597_s23, %s1597_s23, %s1598_s10  }
  0x43   : > { %s1043_s6 = sshll.u32 %s1745_s26, 3  ;;  %s1044_s14 = sshll.u32 %s1588_s30, 3 }
  0x44   : > { %s354_s29 = scalar_lea.hbm %s1887_s1, %s1044_s14  ;;  %s350_s4 = scalar_lea.vmem [#allocation5], %s1043_s6 }
  0x45   : > { %s356_s20 = sshll.u32 %s354_s29, 4  ;;  %s358_s5 = sshll.u32 %s350_s4, 4  ;;  %s357_s20 = int_to_ptr.hbm [resolvable:$true] %s356_s20  ;;  %s359_s5 = int_to_ptr.vmem [resolvable:$true] %s358_s5 }
  0x46   : > { %s347_s18 = scalar_lea.sflag [#allocation6], %s346_s2  ;;  %s1476_s21 = sshra.s32 %s357_s20, 4  ;;  %s1477_s21 = int_to_ptr.hbm [resolvable:$true] %s1476_s21 }
  0x47   : > { %s1478_s0 = scalar_lea.hbm %s1477_s21, 8  ;;  %s1483_s24 = scalar_lea.hbm %s1887_s1, 16 }
  0x48   : > { %p1479_p5 = scmp.ne.s32.totalorder %s1477_s21, %s1478_s0  ;;  %p1484_p11 = scmp.lt.s32.totalorder %s1477_s21, %s1887_s1 }
  0x49   : > { %p1485_p12 = scmp.lt.s32.totalorder %s1483_s24, %s1478_s0 }
  0x4a   : > { %p1481_p8 = pnand %p1479_p5, %p1450_p9 }
  0x4b   : > { %p1486_p2 = por %p1485_p12, %p1484_p11 }
  0x4c   : > { %p1482_p10 = pneg %p1481_p8 }
  0x4e   : > { %p1487_p4 = pnand %p1486_p2, %p1482_p10 }
  0x50   : > { %1490 = shalt.err (!%p1487_p4)
}
  0x51   : > { %1224 = dma.hbm_to_vmem [thread:$0]  (!%p1758_p7), %s357_s20, 128, %s359_s5, %s347_s18  }
  0x52   : > { %367 = sbr.rel (%p1678_p3) target bundleno = 1838 (0x72e), region = 52  ;;  %s1796_s2 = sand.u32 (!%p1678_p3), 1, %s1580_s28  }
  0x53   : > { %s1046_s6 = sshll.u32 (!%p1678_p3), %s1796_s2, 4  ;;  %s370_s29 = scalar_lea.sflag (!%p1678_p3), [#allocation3], %s1796_s2 }
  0x54   : > { %s1802_s0 = scalar_lea.vmem (!%p1678_p3), [#allocation2], %s1046_s6 }
  0x57   : > { %1551 = dma.done.wait (%p1735_p13), %s370_s29, 256  }
  0x58   : > { %1553 = vsyncadd (%p1735_p13), %s370_s29, 4294967040  ;;  %s379_s13 = sand.u32 1, %s1673_s12   ;;  %s1047_s22 = sshll.u32 %s1796_s2, 3 }
  0x59   : > { %s380_s23 = scalar_lea.sflag [#allocation6], %s379_s13  ;;  %s383_s10 = scalar_lea.vmem [#allocation5], %s1047_s22 }
  0x5a   : > { %1555 = dma.done.wait (%p1735_p13), %s380_s23, 128  }
  0x5b   : > { %1557 = vsyncadd (%p1735_p13), %s380_s23, 4294967168 }
  0x5c   : > { %1559 = dma.done.wait (%p50_p1), [#allocation6], 512  }
  0x5d   : > { %1561 = vsyncadd (%p50_p1), [#allocation6], 4294966784 }
  0x5e   : > { %1563 = dma.done.wait (%p50_p1), [#allocation9], 1280  }
  0x5f   : > { %1565 = vsyncadd (%p50_p1), [#allocation9], 4294966016 }
  0x60   : > { %1567 = dma.done.wait (%p50_p1), [#allocation12], 1024  }
  0x61   : > { %1569 = vsyncadd (%p50_p1), [#allocation12], 4294966272  ;;  %v1127_v0 = vld [vmem:[#allocation8 + $0x8] sm:$0xff]  ;;  %v1125_v1 = vld [vmem:[#allocation7 + $0x18] sm:$0xff]  ;;  %vm520_vm0 = vcmask 261120   ;;  %vm485_vm1 = vcmask 523264  }
  0x62   : > { %530 = vmatpush.bf16.msra.mxu3 %v1127_v0  ;;  %v1126_v2 = vld [vmem:[#allocation8] sm:$0xff]  ;;  %v451_v3 = vld [vmem:[%s383_s10] sm:$0xff]  ;;  %493 = vmatpush.bf16.msra.mxu0 %v1125_v1  ;;  %v1123_v6 = vld [vmem:[#allocation7 + $0x8] sm:$0xff]  ;;  %vm565_vm2 = vcmask 1043456   ;;  %s1599_s19 = smov 8   ;;  %s1600_s15 = smov 16  }
  0x63   : > { %v1124_v4 = vld [vmem:[#allocation7 + $0x10] sm:$0xff]  ;;  %v452_v5 = vpack.c.bf16 %v451_v3, %v451_v3  ;;  %v1122_v7 = vld [vmem:[#allocation7] sm:$0xff]  ;;  %v449_v9 = vld [vmem:[%s1802_s0 + $0x8] sm:$0xff]  ;;  %s1601_s17 = smov 32   ;;  %s1602_s20 = smov 64   ;;  %vm766_vm3 = vcmask 130048  }
  0x64   : > { %v448_v8 = vld [vmem:[%s1802_s0] sm:$0xff]  ;;  %v1175_v14 = vld [vmem:[#allocation10 + $0x38] sm:$0xff]   ;;  %v1173_v25 = vld [vmem:[#allocation10 + $0x28] sm:$0xff]   ;;  %s1136_s18 = sshll.u32 %s1673_s12, 4  ;;  %s446_s21 = scalar_lea.vmem [#allocation14], %s1046_s6 }
  0x65   : > { %v450_v10 = vpack.c.bf16 %v449_v9, %v448_v8  ;;  %v1174_v16 = vld [vmem:[#allocation10 + $0x30] sm:$0xff]   ;;  %v1167_v17 = vunpack.c.l.bf16 %v1175_v14  ;;  %v1168_v18 = vunpack.c.h.bf16 %v1175_v14  ;;  %v1159_v28 = vunpack.c.l.bf16 %v1173_v25  ;;  %v1172_v33 = vld [vmem:[#allocation10 + $0x20] sm:$0xff]   ;;  %v1171_v39 = vld [vmem:[#allocation10 + $0x18] sm:$0xff]   ;;  %s885_s24 = scalar_lea.hbm %s1894_s8, %s1136_s18  ;;  %s886_s16 = sshll.u32 %s446_s21, 4  ;;  %s887_s16 = int_to_ptr.vmem [resolvable:$true] %s886_s16 }
  0x66   : > { %531 = vmatpush.bf16.msra.mxu3 %v1126_v2  ;;  %494 = vmatpush.bf16.msra.mxu0 %v1124_v4  ;;  %v1163_v23 = vunpack.c.l.bf16 %v1174_v16  ;;  %v1164_v24 = vunpack.c.h.bf16 %v1174_v16  ;;  %v1160_v32 = vunpack.c.h.bf16 %v1173_v25  ;;  %v1155_v34 = vunpack.c.l.bf16 %v1172_v33  ;;  %v1170_v45 = vld [vmem:[#allocation10 + $0x10] sm:$0xff]   ;;  %v1169_v51 = vld [vmem:[#allocation10 + $0x8] sm:$0xff]   ;;  %v1138_v57 = vld [vmem:[#allocation10] sm:$0xff]   ;;  %s888_s14 = sshll.u32 %s885_s24, 4  ;;  %s874_s12 = scalar_lea.sflag [#allocation4], %s1796_s2  ;;  %s889_s14 = int_to_ptr.hbm [resolvable:$true] %s888_s14 }
  0x67   : > { %v1156_v38 = vunpack.c.h.bf16 %v1172_v33  ;;  %v1151_v40 = vunpack.c.l.bf16 %v1171_v39  ;;  %v1152_v44 = vunpack.c.h.bf16 %v1171_v39  ;;  %v1147_v46 = vunpack.c.l.bf16 %v1170_v45  ;;  %s1520_s29 = sshra.s32 %s889_s14, 4  ;;  %s1526_s22 = scalar_lea.hbm %s1894_s8, 32  ;;  %s1521_s29 = int_to_ptr.hbm [resolvable:$true] %s1520_s29 }
  0x68   : > { %v1148_v50 = vunpack.c.h.bf16 %v1170_v45  ;;  %v1143_v52 = vunpack.c.l.bf16 %v1169_v51  ;;  %v1144_v56 = vunpack.c.h.bf16 %v1169_v51  ;;  %v1139_v58 = vunpack.c.l.bf16 %v1138_v57  ;;  %s1522_s6 = scalar_lea.hbm %s1521_s29, 16  ;;  %p1527_p7 = scmp.lt.s32.totalorder %s1521_s29, %s1894_s8 }
  0x69   : > { %1079 = vmatmul.msk.bf16.vlgmr.msra.gmra.mxu3 %vm520_vm0, %v452_v5  ;;  %v1140_v62 = vunpack.c.h.bf16 %v1138_v57  ;;  %v1131_v57 = vld [vmem:[#allocation11 + $0x18] sm:$0xff]  ;;  %p1523_p1 = scmp.ne.s32.totalorder %s1521_s29, %s1522_s6  ;;  %p1528_p9 = scmp.lt.s32.totalorder %s1526_s22, %s1522_s6 }
  0x6a   : > { %495 = vmatpush.bf16.msra.mxu0 %v1123_v6 }
  0x6b   : > { %p1524_p3 = pnand %p1523_p1, %p1739_p0  ;;  %p1529_p5 = por %p1528_p9, %p1527_p7 }
  0x6d   : > { %p1525_p13 = pneg %p1524_p3 }
  0x6e   : > { %496 = vmatpush.bf16.msra.mxu0 %v1122_v7 }
  0x6f   : > { %p1530_p8 = pnand %p1529_p5, %p1525_p13 }
  0x71   : > { %1070 = vmatmul.msk.bf16.vlgmr.msra.gmra.mxu0 %vm485_vm1, %v450_v10 }
  0xec   : > { %v533_v11 = vpop.f32.mrf.mxu3 }
  0xed   : > { %v561_v12 = vpack.c.bf16 %v533_v11, %v533_v11 }
  0xee   : > { %v498_v3 = vpop.f32.mrf.mxu0 }
  0xef   : > { %v563_v13 = vunpack.c.l.b16 %v561_v12 }
  0xf1   : > { %v564_v15 = vpack.c.b16 %v563_v13, %v563_v13 }
  0xf3   : > { %v568_v19 = vsel %vm565_vm2, %v561_v12, %v564_v15 }
  0xf4   : > { %v570_v20 = vunpack.c.l.bf16 %v568_v19  ;;  %v571_v21 = vunpack.c.h.bf16 %v568_v19  ;;  %v535_v22 = vpop.f32.mrf.mxu3 }
  0xf6   : > { %v602_v26 = vmul.f32 %v1167_v17, %v570_v20  ;;  %v603_v27 = vmul.f32 %v1168_v18, %v571_v21  ;;  %v600_v30 = vmul.f32 %v1163_v23, %v570_v20  ;;  %v601_v31 = vmul.f32 %v1164_v24, %v571_v21  ;;  %v500_v4 = vpop.f32.mrf.mxu0 }
  0xf7   : > { %v598_v36 = vmul.f32 %v1159_v28, %v570_v20  ;;  %v599_v37 = vmul.f32 %v1160_v32, %v571_v21  ;;  %v596_v42 = vmul.f32 %v1155_v34, %v570_v20  ;;  %v597_v43 = vmul.f32 %v1156_v38, %v571_v21 }
  0xf8   : > { %v611_v29 = vpack.c.bf16 %v603_v27, %v602_v26  ;;  %v610_v35 = vpack.c.bf16 %v601_v31, %v600_v30  ;;  %v594_v48 = vmul.f32 %v1151_v40, %v570_v20  ;;  %v595_v49 = vmul.f32 %v1152_v44, %v571_v21 }
  0xf9   : > { %v609_v41 = vpack.c.bf16 %v599_v37, %v598_v36  ;;  %v608_v47 = vpack.c.bf16 %v597_v43, %v596_v42  ;;  %v592_v54 = vmul.f32 %v1147_v46, %v570_v20  ;;  %v593_v55 = vmul.f32 %v1148_v50, %v571_v21 }
  0xfa   : > { %612 = vmatpush.bf16.xpose.msra.mxu2 %v611_v29  ;;  %685 = vmatpush.bf16.msrb.mxu3 %v611_v29  ;;  %v607_v53 = vpack.c.bf16 %v595_v49, %v594_v48  ;;  %v590_v60 = vmul.f32 %v1143_v52, %v570_v20  ;;  %v591_v61 = vmul.f32 %v1144_v56, %v571_v21  ;;  %v1130_v56 = vld [vmem:[#allocation11 + $0x10] sm:$0xff] }
  0xfb   : > { %v606_v59 = vpack.c.bf16 %v593_v55, %v592_v54  ;;  %v588_v0 = vmul.f32 %v1139_v58, %v570_v20  ;;  %v589_v1 = vmul.f32 %v1140_v62, %v571_v21  ;;  %v503_v5 = vpack.c.bf16 %v500_v4, %v498_v3  ;;  %v1128_v54 = vld [vmem:[#allocation11] sm:$0xff]  ;;  %v1129_v55 = vld [vmem:[#allocation11 + $0x8] sm:$0xff] }
  0xfc   : > { %v605_v63 = vpack.c.bf16 %v591_v61, %v590_v60  ;;  %v1133_v58 = vld [vmem:[#allocation13 + $0x8] sm:$0xff]  ;;  %v1134_v61 = vld [vmem:[#allocation13 + $0x10] sm:$0xff] }
  0xfd   : > { %v604_v2 = vpack.c.bf16 %v589_v1, %v588_v0  ;;  %777 = vmatpush.bf16.msrb.mxu0 %v1133_v58  ;;  %v1135_v1 = vld [vmem:[#allocation13 + $0x18] sm:$0xff] }
  0xfe   : > { %686 = vmatpush.bf16.msrb.mxu3 %v610_v35 }
 0x102   : > { %613 = vmatpush.bf16.xpose.msra.mxu2 %v610_v35  ;;  %687 = vmatpush.bf16.msrb.mxu3 %v609_v41 }
 0x106   : > { %688 = vmatpush.bf16.msrb.mxu3 %v608_v47 }
 0x10a   : > { %614 = vmatpush.bf16.xpose.msra.mxu2 %v609_v41  ;;  %689 = vmatpush.bf16.msrb.mxu3 %v607_v53 }
 0x10e   : > { %690 = vmatpush.bf16.msrb.mxu3 %v606_v59 }
 0x112   : > { %615 = vmatpush.bf16.xpose.msra.mxu2 %v608_v47  ;;  %691 = vmatpush.bf16.msrb.mxu3 %v605_v63 }
 0x116   : > { %692 = vmatpush.bf16.msrb.mxu3 %v604_v2 }
 0x11a   : > { %616 = vmatpush.bf16.xpose.msra.mxu2 %v607_v53  ;;  %827 = vmatpush.bf16.msra.mxu3 %v1134_v61 }
 0x122   : > { %617 = vmatpush.bf16.xpose.msra.mxu2 %v606_v59  ;;  %v1132_v59 = vld [vmem:[#allocation13] sm:$0xff] }
 0x123   : > { %800 = vmatpush.bf16.msra.mxu0 %v1132_v59 }
 0x12a   : > { %618 = vmatpush.bf16.xpose.msra.mxu2 %v605_v63 }
 0x132   : > { %619 = vmatpush.bf16.xpose.msra.mxu2 %v604_v2 }
 0x139   : > { %620 = vmatmul.bf16.vlgmr.msra.gmra.mxu2 %v503_v5 }
 0x1bc   : > { %v621_v6 = vpop.f32.mrf.mxu2 }
 0x1bd   : > { %626 = vrot.lane.b32.xlu0 %v621_v6, %s1599_s19 }
 0x1c4   : > { %v623_v7 = vpop.f32.mrf.mxu2 }
 0x1c5   : > { %628 = vrot.lane.b32.xlu0 %v623_v7, %s1599_s19 }
 0x22f   : > { %v627_v8 = vpop.permute.xlu0 %626 }
 0x230   : > { %v630_v9 = vmax.f32 %v621_v6, %v627_v8 }
 0x232   : > { %632 = vrot.lane.b32.xlu1 %v630_v9, %s1600_s15 }
 0x237   : > { %v629_v10 = vpop.permute.xlu0 %628 }
 0x238   : > { %v631_v11 = vmax.f32 %v623_v7, %v629_v10 }
 0x23a   : > { %634 = vrot.lane.b32.xlu1 %v631_v11, %s1600_s15 }
 0x2a4   : > { %v633_v12 = vpop.permute.xlu1 %632 }
 0x2a5   : > { %v636_v13 = vmax.f32 %v630_v9, %v633_v12 }
 0x2a7   : > { %638 = vrot.lane.b32.xlu2 %v636_v13, %s1601_s17 }
 0x2ac   : > { %v635_v14 = vpop.permute.xlu1 %634 }
 0x2ad   : > { %v637_v15 = vmax.f32 %v631_v11, %v635_v14 }
 0x2af   : > { %640 = vrot.lane.b32.xlu2 %v637_v15, %s1601_s17 }
 0x301   : > { %v639_v16 = vpop.permute.xlu2 %638 }
 0x302   : > { %v642_v17 = vmax.f32 %v636_v13, %v639_v16 }
 0x304   : > { %644 = vrot.lane.b32.xlu0 %v642_v17, %s1602_s20 }
 0x309   : > { %v641_v18 = vpop.permute.xlu2 %640 }
 0x30a   : > { %v643_v19 = vmax.f32 %v637_v15, %v641_v18 }
 0x30c   : > { %646 = vrot.lane.b32.xlu1 %v643_v19, %s1602_s20 }
 0x376   : > { %v645_v20 = vpop.permute.xlu0 %644 }
 0x377   : > { %v648_v21 = vmax.f32 %v642_v17, %v645_v20  ;;  %v1287_v17 = vld [vmem:[%s1893_s7] ss:$0 sm:$0xff] }
 0x379   : > { %v650_v22 = vsub.f32 %v621_v6, %v648_v21 }
 0x37b   : > { %v652_v23 = vmul.f32 1.442695, %v650_v22 }
 0x37d   : > { %1288 = vpow2.f32 %v652_v23 }
 0x37e   : > { %v647_v24 = vpop.permute.xlu1 %646 }
 0x37f   : > { %v649_v25 = vmax.f32 %v643_v19, %v647_v24 }
 0x381   : > { %v651_v26 = vsub.f32 %v623_v7, %v649_v25 }
 0x383   : > { %v1289_v27 = vpop.eup %1288  ;;  %v654_v28 = vmul.f32 1.442695, %v651_v26 }
 0x384   : > { %656 = vrot.lane.b32.xlu2 %v1289_v27, %s1599_s19 }
 0x385   : > { %1290 = vpow2.f32 %v654_v28 }
 0x38b   : > { %v1291_v29 = vpop.eup %1290 }
 0x38c   : > { %658 = vrot.lane.b32.xlu0 %v1291_v29, %s1599_s19 }
 0x3de   : > { %v657_v30 = vpop.permute.xlu2 %656 }
 0x3df   : > { %v660_v31 = vadd.f32 %v1289_v27, %v657_v30 }
 0x3e1   : > { %662 = vrot.lane.b32.xlu1 %v660_v31, %s1600_s15 }
 0x3fe   : > { %v659_v32 = vpop.permute.xlu0 %658 }
 0x3ff   : > { %v661_v33 = vadd.f32 %v1291_v29, %v659_v32 }
 0x401   : > { %664 = vrot.lane.b32.xlu2 %v661_v33, %s1600_s15 }
 0x453   : > { %v663_v34 = vpop.permute.xlu1 %662 }
 0x454   : > { %v666_v35 = vadd.f32 %v663_v34, %v660_v31 }
 0x456   : > { %668 = vrot.lane.b32.xlu0 %v666_v35, %s1601_s17 }
 0x45b   : > { %v665_v36 = vpop.permute.xlu2 %664 }
 0x45c   : > { %v667_v37 = vadd.f32 %v665_v36, %v661_v33 }
 0x45e   : > { %670 = vrot.lane.b32.xlu1 %v667_v37, %s1601_s17 }
 0x4c8   : > { %v669_v38 = vpop.permute.xlu0 %668 }
 0x4c9   : > { %v672_v39 = vadd.f32 %v669_v38, %v666_v35 }
 0x4cb   : > { %674 = vrot.lane.b32.xlu2 %v672_v39, %s1602_s20 }
 0x4d0   : > { %v671_v40 = vpop.permute.xlu1 %670 }
 0x4d1   : > { %v673_v41 = vadd.f32 %v671_v40, %v667_v37 }
 0x4d3   : > { %676 = vrot.lane.b32.xlu0 %v673_v41, %s1602_s20 }
 0x525   : > { %v675_v42 = vpop.permute.xlu2 %674 }
 0x526   : > { %v678_v43 = vadd.f32 %v675_v42, %v672_v39 }
 0x528   : > { %1292 = vrcp.f32 %v678_v43 }
 0x52e   : > { %v1293_v46 = vpop.eup %1292 }
 0x52f   : > { %v682_v48 = vmul.f32 %v1293_v46, %v1289_v27 }
 0x545   : > { %v677_v44 = vpop.permute.xlu0 %676 }
 0x546   : > { %v679_v45 = vadd.f32 %v677_v44, %v673_v41 }
 0x548   : > { %1294 = vrcp.f32 %v679_v45 }
 0x54e   : > { %v1295_v47 = vpop.eup %1294 }
 0x54f   : > { %v683_v49 = vmul.f32 %v1295_v47, %v1291_v29 }
 0x551   : > { %v684_v50 = vpack.c.bf16 %v683_v49, %v682_v48 }
 0x553   : > { %693 = vmatmul.bf16.vlgmr.msrb.gmra.mxu3 %v684_v50 }
 0x5d6   : > { %v694_v51 = vpop.f32.mrf.mxu3 }
 0x5de   : > { %v696_v52 = vpop.f32.mrf.mxu3 }
 0x5df   : > { %v699_v53 = vpack.c.bf16 %v696_v52, %v694_v51 }
 0x5e1   : > { %731 = vmatpush.bf16.xpose.msra.mxu1 %v699_v53 }
 0x5e8   : > { %732 = vmatmul.bf16.vlgmr.msra.gmra.mxu1 %v1128_v54 }
 0x5f8   : > { %737 = vmatmul.bf16.gmra.mxu1 %v1129_v55 }
 0x608   : > { %742 = vmatmul.bf16.gmra.mxu1 %v1130_v56 }
 0x618   : > { %747 = vmatmul.bf16.gmra.mxu1 %v1131_v57 }
 0x665   : > { %v733_v60 = vpop.f32.mrf.mxu1 }
 0x66d   : > { %v735_v62 = vpop.f32.mrf.mxu1 }
 0x66e   : > { %v753_v5 = vpack.c.bf16 %v735_v62, %v733_v60 }
 0x675   : > { %v738_v63 = vpop.f32.mrf.mxu1 }
 0x67d   : > { %v740_v0 = vpop.f32.mrf.mxu1 }
 0x67e   : > { %v756_v2 = vpack.c.bf16 %v740_v0, %v738_v63 }
 0x680   : > { %1100 = vmatmul.msk.bf16.vlgmr.msrb.gmra.mxu0 %vm766_vm3, %v756_v2 }
 0x681   : > { %856 = vmatpush.bf16.msrb.mxu0 %v1135_v1 }
 0x685   : > { %v743_v3 = vpop.f32.mrf.mxu1 }
 0x68d   : > { %v745_v4 = vpop.f32.mrf.mxu1 }
 0x68e   : > { %v807_v6 = vpack.c.bf16 %v745_v4, %v743_v3 }
 0x690   : > { %1105 = vmatmul.msk.bf16.vlgmr.msra.gmra.mxu0 %vm766_vm3, %v753_v5  ;;  %1110 = vmatmul.msk.bf16.vlgmr.msra.gmra.mxu3 %vm766_vm3, %v807_v6 }
 0x695   : > { %v748_v7 = vpop.f32.mrf.mxu1 }
 0x69d   : > { %v750_v8 = vpop.f32.mrf.mxu1 }
 0x69e   : > { %v836_v9 = vpack.c.bf16 %v750_v8, %v748_v7 }
 0x6a0   : > { %1115 = vmatmul.msk.bf16.vlgmr.msrb.gmra.mxu0 %vm766_vm3, %v836_v9 }
 0x6fd   : > { %v779_v10 = vpop.f32.mrf.mxu0 }
 0x705   : > { %v781_v11 = vpop.f32.mrf.mxu0 }
 0x70d   : > { %v802_v12 = vpop.f32.mrf.mxu0 }
 0x70e   : > { %v803_v15 = vadd.f32 %v802_v12, %v779_v10 }
 0x713   : > { %v829_v14 = vpop.f32.mrf.mxu3 }
 0x714   : > { %v834_v16 = vadd.f32 %v829_v14, %v803_v15 }
 0x715   : > { %v804_v13 = vpop.f32.mrf.mxu0 }
 0x716   : > { %v805_v22 = vadd.f32 %v804_v13, %v781_v11 }
 0x71b   : > { %v831_v21 = vpop.f32.mrf.mxu3 }
 0x71c   : > { %v835_v23 = vadd.f32 %v831_v21, %v805_v22 }
 0x71d   : > { %v858_v18 = vpop.f32.mrf.mxu0 }
 0x71e   : > { %v863_v19 = vadd.f32 %v858_v18, %v834_v16 }
 0x720   : > { %v869_v20 = vadd.f32 %v1287_v17, %v863_v19 }
 0x722   : > { %871 = vst.msk [vmem:[%s446_s21] sm:$0xff] %vm485_vm1, %v869_v20 }
 0x725   : > { %v860_v24 = vpop.f32.mrf.mxu0 }
 0x726   : > { %v864_v25 = vadd.f32 %v860_v24, %v835_v23 }
 0x728   : > { %v870_v26 = vadd.f32 %v1287_v17, %v864_v25 }
 0x72a   : > { %872 = vst.msk [vmem:[%s446_s21 + $0x8] sm:$0xff] %vm485_vm1, %v870_v26 }
 0x72b   : > { %1533 = shalt.err (!%p1530_p8)
}
 0x72c   : > { %s1603_s2 = smov 128  }
 0x72d   : > { %1200 = dma.vmem_to_hbm [thread:$0]  (%p1739_p0), %s887_s16, 256, %s889_s14, %s874_s12, %s1603_s2, %s1603_s2, %s1599_s19  }
 0x72e PF: > { %s903_s15 = sand.u32 1, %s1576_s27   ;;  %p1917_p10 = scmp.ge.s32.totalorder %s1588_s30, 2 }
 0x72f   : > { %s904_s17 = scalar_lea.sflag [#allocation4], %s903_s15 }
 0x730   : > { %p1226_p11 = pnand %p1917_p10, %p1747_p6 }
 0x732   : > { %p1227_p12 = pneg %p1226_p11 }
 0x734   : > { %1571 = dma.done.wait (%p1227_p12), %s904_s17, 256  }
 0x735   : > { %1573 = vsyncadd (%p1227_p12), %s904_s17, 4294967040  ;;  %s1918_s20 = sld [smem:[#allocation21_spill]]  ;;  %p26_p2 = scmp.ge.s32.totalorder %s1715_s9, 4  }
 0x736   : > { %s1919_s29 = sld [smem:[#allocation22_spill]]  ;;  %s1920_s27 = smov %s1580_s28 }
 0x737   : > { %s1922_s30 = smov %s1715_s9  ;;  %28 = sbr.rel (!%p26_p2) target bundleno = 16 (0x10), region = 133 }
 0x73b   : > { %s1921_s28 = smov %s1918_s20 }
 0x73c   :  { %910 = vsyncpa [#allocation3], 1 }
 0x73d   :  { %912 = vsyncpa [#allocation3 + $0x1], 1 }
 0x73e   :  { %913 = vsyncpa [#allocation6], 1 }
 0x73f   :  { %915 = vsyncpa [#allocation6 + $0x1], 1 }
 0x740   :  { %916 = vsyncpa [#allocation9], 1 }
 0x741   :  { %917 = vsyncpa [#allocation12], 1 }
 0x742   :  { %918 = vsyncpa [#allocation4], 1 }
 0x743   :  { %920 = vsyncpa [#allocation4 + $0x1], 1 }

</bundles_post_ra>
